<compile_context>
chip_gen: v5e
topology: v5e:2x2
jax: 0.10.0
libtpu: 0.0.40
codegen_flags: <defaults>
</compile_context>

<pallas_src>
import functools

import jax
import jax.numpy as jnp
from jax import lax
from jax.experimental import pallas as pl
from jax.experimental.pallas import tpu as pltpu

# Layer dims of TimeModel: 5 -> 64 -> 32 -> 16 -> 8 -> 1
_DIMS = (5, 64, 32, 16, 8, 1)
_LANE = 128                      # lane width == inner batch chunk
_ROW_OFFS = (0, 64, 96, 112, 120)  # row offset of each layer inside the packed block


def pack_params(params):
    """Pack W1..W5 (PyTorch layout [out, in]) and b1..b5 ([out]) into one
    (128, 128) f32 block: layer l occupies rows [off, off+out); weight in
    cols [0, in), bias in column `in`."""
    P = jnp.zeros((128, 128), jnp.float32)
    for li in range(5):
        kin, out = _DIMS[li], _DIMS[li + 1]
        ro = _ROW_OFFS[li]
        w = params[f"w{li + 1}"].astype(jnp.float32)   # [out, in]
        b = params[f"b{li + 1}"].astype(jnp.float32)   # [out]
        P = P.at[ro:ro + out, 0:kin].set(w)
        P = P.at[ro:ro + out, kin].set(b)
    return P


def _mlp_kernel(x_ref, w_ref, o_ref, *, n_chunks):
    # x_ref: [5, tb]   (batch on lanes)
    # w_ref: [128, 128] packed weights+biases (resident, constant index_map)
    # o_ref: [1, tb]   lane-dense output tile

    # Unpack weights/biases once per grid step (static slices of the VMEM ref).
    ws, bs = [], []
    for li in range(5):
        kin, out = _DIMS[li], _DIMS[li + 1]
        ro = _ROW_OFFS[li]
        ws.append(w_ref[ro:ro + out, 0:kin])            # [out, in]
        bs.append(w_ref[ro:ro + out, kin:kin + 1])      # [out, 1] -> lane broadcast

    def chunk(c, carry):
        off = pl.multiple_of(c * _LANE, _LANE)
        h = x_ref[:, pl.ds(off, _LANE)]                 # [5, 128]
        # fc1..fc4 with ReLU
        for li in range(4):
            h = jnp.dot(ws[li], h, preferred_element_type=jnp.float32) + bs[li]
            h = jnp.maximum(h, 0.0)
        # fc5 (no activation)
        h = jnp.dot(ws[4], h, preferred_element_type=jnp.float32) + bs[4]  # [1, 128]
        o_ref[:, pl.ds(off, _LANE)] = h.astype(o_ref.dtype)
        return carry

    lax.fori_loop(0, n_chunks, chunk, 0, unroll=True)


def time_model_forward(x, params, *, tb=1024):
    """x: [B, 5] float32, params: PyTorch-layout dict (w: [out,in], b: [out]).
    Returns [B, 1] float32 (same semantics as TimeModel.forward)."""
    B, fin = x.shape
    assert fin == _DIMS[0]

    # Batch tile: multiple of 128 lanes, no larger than the lane-padded batch.
    tb = max(_LANE, (int(tb) // _LANE) * _LANE)
    b_lane = -(-B // _LANE) * _LANE
    tb = min(tb, b_lane)
    bp = -(-B // tb) * tb                 # batch padded to a tile multiple
    n_chunks = tb // _LANE

    # Transpose so batch sits on lanes; zero-pad the batch tail.
    xt = jnp.zeros((_DIMS[0], bp), jnp.float32).at[:, :B].set(
        x.astype(jnp.float32).T)

    wpk = pack_params(params)

    kernel = functools.partial(_mlp_kernel, n_chunks=n_chunks)
    out = pl.pallas_call(
        kernel,
        out_shape=jax.ShapeDtypeStruct((1, bp), jnp.float32),
        grid_spec=pltpu.PrefetchScalarGridSpec(
            num_scalar_prefetch=0,
            grid=(bp // tb,),
            in_specs=[
                pl.BlockSpec((_DIMS[0], tb), lambda i: (0, i)),  # x tile (lane-dense)
                pl.BlockSpec((128, 128), lambda i: (0, 0)),      # packed weights, resident
            ],
            out_specs=pl.BlockSpec((1, tb), lambda i: (0, i)),   # lane-dense output
        ),
        compiler_params=pltpu.CompilerParams(
            dimension_semantics=("parallel",)),                  # megacore sharding on v7x
    )(xt, wpk)

    return out[0, :B][:, None]


def init_params(key):
    """PyTorch-default-like init: uniform in [-1/sqrt(fan_in), 1/sqrt(fan_in)],
    weights stored [out, in] and biases [out] (same layout as nn.Linear)."""
    params = {}
    keys = jax.random.split(key, 2 * 5)
    for li in range(5):
        fan_in, fan_out = _DIMS[li], _DIMS[li + 1]
        bound = 1.0 / (fan_in ** 0.5)
        params[f"w{li + 1}"] = jax.random.uniform(
            keys[2 * li], (fan_out, fan_in), jnp.float32, -bound, bound)
        params[f"b{li + 1}"] = jax.random.uniform(
            keys[2 * li + 1], (fan_out,), jnp.float32, -bound, bound)
    return params


def reference_forward(x, params):
    h = x
    for li in range(1, 5):
        h = jnp.maximum(h @ params[f"w{li}"].T + params[f"b{li}"], 0.0)
    return h @ params["w5"].T + params["b5"]


if __name__ == "__main__":
    key = jax.random.PRNGKey(0)
    pkey, xkey = jax.random.split(key)

    params = init_params(pkey)
    x = jax.random.normal(xkey, (16, 5), jnp.float32)  # small demo batch

    out = jax.block_until_ready(time_model_forward(x, params))
    ref = reference_forward(x, params)

    assert out.shape == (16, 1)
    assert jnp.allclose(out, ref, atol=1e-5, rtol=1e-5), "mismatch vs JAX reference"

    print("KERNEL_OK")
</pallas_src>

<mosaic_0001>
module attributes {stable_mosaic.version = 11 : i64} {
  func.func @_mlp_kernel(%arg0: i32, %arg1: memref<5x128xf32, #tpu.memory_space<vmem>>, %arg2: memref<128x128xf32, #tpu.memory_space<vmem>>, %arg3: memref<1x128xf32, #tpu.memory_space<vmem>>) attributes {dimension_semantics = [#tpu.dimension_semantics<parallel>], iteration_bounds = array<i64: 1>, scalar_prefetch = 0 : i64, scratch_operands = 0 : i64, tpu.core_type = #tpu.core_type<tc>, window_params = [{transform_indices = @transform_0, window_bounds = array<i64: 5, 128>}, {pipeline_mode = #tpu.pipeline_mode<synchronous>, transform_indices = @transform_1, window_bounds = array<i64: 128, 128>}, {transform_indices = @transform_2, window_bounds = array<i64: 1, 128>}]} {
    %c0 = arith.constant 0 : index
    %c0_0 = arith.constant 0 : index
    %0 = vector.load %arg2[%c0, %c0_0] : memref<128x128xf32, #tpu.memory_space<vmem>>, vector<64x5xf32>
    %c0_1 = arith.constant 0 : index
    %c5 = arith.constant 5 : index
    %1 = vector.load %arg2[%c0_1, %c5] : memref<128x128xf32, #tpu.memory_space<vmem>>, vector<64x1xf32>
    %c64 = arith.constant 64 : index
    %c0_2 = arith.constant 0 : index
    %2 = vector.load %arg2[%c64, %c0_2] : memref<128x128xf32, #tpu.memory_space<vmem>>, vector<32x64xf32>
    %c64_3 = arith.constant 64 : index
    %c64_4 = arith.constant 64 : index
    %3 = vector.load %arg2[%c64_3, %c64_4] : memref<128x128xf32, #tpu.memory_space<vmem>>, vector<32x1xf32>
    %c96 = arith.constant 96 : index
    %c0_5 = arith.constant 0 : index
    %4 = vector.load %arg2[%c96, %c0_5] : memref<128x128xf32, #tpu.memory_space<vmem>>, vector<16x32xf32>
    %c96_6 = arith.constant 96 : index
    %c32 = arith.constant 32 : index
    %5 = vector.load %arg2[%c96_6, %c32] : memref<128x128xf32, #tpu.memory_space<vmem>>, vector<16x1xf32>
    %c112 = arith.constant 112 : index
    %c0_7 = arith.constant 0 : index
    %6 = vector.load %arg2[%c112, %c0_7] : memref<128x128xf32, #tpu.memory_space<vmem>>, vector<8x16xf32>
    %c112_8 = arith.constant 112 : index
    %c16 = arith.constant 16 : index
    %7 = vector.load %arg2[%c112_8, %c16] : memref<128x128xf32, #tpu.memory_space<vmem>>, vector<8x1xf32>
    %c120 = arith.constant 120 : index
    %c0_9 = arith.constant 0 : index
    %8 = vector.load %arg2[%c120, %c0_9] : memref<128x128xf32, #tpu.memory_space<vmem>>, vector<1x8xf32>
    %c120_10 = arith.constant 120 : index
    %c8 = arith.constant 8 : index
    %9 = vector.load %arg2[%c120_10, %c8] : memref<128x128xf32, #tpu.memory_space<vmem>>, vector<1x1xf32>
    %c0_i32 = arith.constant 0 : i32
    %c128_i32 = arith.constant 128 : i32
    %10 = arith.muli %c0_i32, %c128_i32 : i32
    %11 = tpu.assume_multiple %10, 128 : i32
    %c0_11 = arith.constant 0 : index
    %12 = arith.index_cast %11 : i32 to index
    %13 = vector.load %arg1[%c0_11, %12] : memref<5x128xf32, #tpu.memory_space<vmem>>, vector<5x128xf32>
    %cst = arith.constant dense<0.000000e+00> : vector<64x128xf32>
    %14 = tpu.matmul %0, %13, %cst {dimension_numbers = #tpu.dot_dimension_numbers<[1], [0], [0], [1], [0, 0, 1, 1], [], []>} : vector<64x5xf32>, vector<5x128xf32>, vector<64x128xf32> -> vector<64x128xf32>
    %15 = vector.broadcast %1 : vector<64x1xf32> to vector<64x128xf32>
    %16 = arith.addf %14, %15 : vector<64x128xf32>
    %cst_12 = arith.constant 0.000000e+00 : f32
    %17 = vector.broadcast %cst_12 : f32 to vector<64x128xf32>
    %18 = arith.maximumf %16, %17 : vector<64x128xf32>
    %cst_13 = arith.constant dense<0.000000e+00> : vector<32x128xf32>
    %19 = tpu.matmul %2, %18, %cst_13 {dimension_numbers = #tpu.dot_dimension_numbers<[1], [0], [0], [1], [0, 0, 1, 1], [], []>} : vector<32x64xf32>, vector<64x128xf32>, vector<32x128xf32> -> vector<32x128xf32>
    %20 = vector.broadcast %3 : vector<32x1xf32> to vector<32x128xf32>
    %21 = arith.addf %19, %20 : vector<32x128xf32>
    %cst_14 = arith.constant 0.000000e+00 : f32
    %22 = vector.broadcast %cst_14 : f32 to vector<32x128xf32>
    %23 = arith.maximumf %21, %22 : vector<32x128xf32>
    %cst_15 = arith.constant dense<0.000000e+00> : vector<16x128xf32>
    %24 = tpu.matmul %4, %23, %cst_15 {dimension_numbers = #tpu.dot_dimension_numbers<[1], [0], [0], [1], [0, 0, 1, 1], [], []>} : vector<16x32xf32>, vector<32x128xf32>, vector<16x128xf32> -> vector<16x128xf32>
    %25 = vector.broadcast %5 : vector<16x1xf32> to vector<16x128xf32>
    %26 = arith.addf %24, %25 : vector<16x128xf32>
    %cst_16 = arith.constant 0.000000e+00 : f32
    %27 = vector.broadcast %cst_16 : f32 to vector<16x128xf32>
    %28 = arith.maximumf %26, %27 : vector<16x128xf32>
    %cst_17 = arith.constant dense<0.000000e+00> : vector<8x128xf32>
    %29 = tpu.matmul %6, %28, %cst_17 {dimension_numbers = #tpu.dot_dimension_numbers<[1], [0], [0], [1], [0, 0, 1, 1], [], []>} : vector<8x16xf32>, vector<16x128xf32>, vector<8x128xf32> -> vector<8x128xf32>
    %30 = vector.broadcast %7 : vector<8x1xf32> to vector<8x128xf32>
    %31 = arith.addf %29, %30 : vector<8x128xf32>
    %cst_18 = arith.constant 0.000000e+00 : f32
    %32 = vector.broadcast %cst_18 : f32 to vector<8x128xf32>
    %33 = arith.maximumf %31, %32 : vector<8x128xf32>
    %cst_19 = arith.constant dense<0.000000e+00> : vector<1x128xf32>
    %34 = tpu.matmul %8, %33, %cst_19 {dimension_numbers = #tpu.dot_dimension_numbers<[1], [0], [0], [1], [0, 0, 1, 1], [], []>} : vector<1x8xf32>, vector<8x128xf32>, vector<1x128xf32> -> vector<1x128xf32>
    %35 = vector.broadcast %9 : vector<1x1xf32> to vector<1x128xf32>
    %36 = arith.addf %34, %35 : vector<1x128xf32>
    %c0_20 = arith.constant 0 : index
    %37 = arith.index_cast %11 : i32 to index
    %38 = vector.load %arg3[%c0_20, %37] : memref<1x128xf32, #tpu.memory_space<vmem>>, vector<1x128xf32>
    tpu.vector_store %arg3[%c0_20, %37], %36 {strides = array<i32>} : memref<1x128xf32, #tpu.memory_space<vmem>>, vector<1x128xf32>,
    %c1_i32 = arith.constant 1 : i32
    return
  }
  func.func @transform_0(%arg0: i32) -> (i32, i32) {
    %c0_i32 = arith.constant 0 : i32
    %c0_i32_0 = arith.constant 0 : i32
    return %c0_i32, %arg0 : i32, i32
  }
  func.func @transform_1(%arg0: i32) -> (i32, i32) {
    %c0_i32 = arith.constant 0 : i32
    %c0_i32_0 = arith.constant 0 : i32
    %c0_i32_1 = arith.constant 0 : i32
    return %c0_i32, %c0_i32_0 : i32, i32
  }
  func.func @transform_2(%arg0: i32) -> (i32, i32) {
    %c0_i32 = arith.constant 0 : i32
    %c0_i32_0 = arith.constant 0 : i32
    return %c0_i32, %arg0 : i32, i32
  }
}

</mosaic_0001>

<bundles_post_ra>
// kernel: tpu_custom_call.1
= control target key start
LH: loop header
LB: loop body
LE: loop exit
PB: predicated region body
PF: predicated region fallthrough
CT: control target
= control target key end

     0   :  { %7 = vsyncpa [#allocation3], 0  ;;  %s506_s0 = inlined_call_operand.hbm [shape: f32[5,128], index: 0, kind: input, shape index: {}]   ;;  %s507_s1 = inlined_call_operand.hbm [shape: f32[128,128], index: 1, kind: input, shape index: {}]   ;;  %s508_s2 = inlined_call_operand.hbm [shape: f32[1,128], index: 2, kind: output, shape index: {}]  }
   0x1   :  { %8 = vsyncpa [#allocation6], 0 }
   0x2   :  { %9 = vsyncpa [#allocation4], 0  ;;  %s15_s11 = sshll.u32 %s506_s0, 4  ;;  %s464_s12 = smov [#allocation2]   ;;  %s16_s11 = int_to_ptr.hbm [resolvable:$true] %s15_s11 }
   0x3   :  { %s17_s13 = sshll.u32 %s464_s12, 4  ;;  %s25_s16 = sshll.u32 %s507_s1, 4  ;;  %s18_s13 = int_to_ptr.vmem [resolvable:$true] %s17_s13  ;;  %s26_s16 = int_to_ptr.hbm [resolvable:$true] %s25_s16 }
   0x4   :  { %20 = dma.hbm_to_vmem [thread:$0]  %s16_s11, 128, %s18_s13, [#allocation3]  }
   0x5   :  { %s465_s17 = smov [#allocation5]   ;;  %s466_s19 = smov 128  }
   0x6   :  { %s27_s18 = sshll.u32 %s465_s17, 4  ;;  %s467_s20 = smov 8   ;;  %s28_s18 = int_to_ptr.vmem [resolvable:$true] %s27_s18 }
   0x7   :  { %33 = dma.hbm_to_vmem [thread:$0]  %s26_s16, 2048, %s28_s18, [#allocation6], %s466_s19, %s466_s19, %s467_s20  }
   0x8   :  { %458 = dma.done.wait [#allocation3], 128  }
   0x9   :  { %459 = vsyncadd [#allocation3], 4294967168 }
   0xa   :  { %460 = dma.done.wait [#allocation6], 2048  }
   0xb   :  { %461 = vsyncadd [#allocation6], 4294965248  ;;  %v468_v0 = vmov 5   ;;  %vm116_vm0 = vcmask 1044480   ;;  %vm99_vm1 = vcmask 39936   ;;  %v47_v2 = vld [vmem:[#allocation5 + $0x28] sm:$0xff] }
   0xc   :  { %376 = vset.pattern.permute.xlu1 %v468_v0  ;;  %375 = vset.pattern.permute.xlu0 %v468_v0  ;;  %v58_v1 = vld [vmem:[#allocation2] sm:$0x1f]  ;;  %v42_v3 = vld [vmem:[#allocation5] sm:$0xff]  ;;  %v43_v7 = vld [vmem:[#allocation5 + $0x8] sm:$0xff]  ;;  %v469_v29 = vmov 64   ;;  %vm189_vm2 = vcmask 523264  }
   0xd   :  { %377 = vset.pattern.permute.xlu2 %v468_v0  ;;  %347 = vmatpush.msk.msra.mxu0 %vm116_vm0, %v58_v1  ;;  %v49_v4 = vld [vmem:[#allocation5 + $0x38] sm:$0xff]  ;;  %v46_v6 = vld [vmem:[#allocation5 + $0x20] sm:$0xff]  ;;  %v48_v8 = vld [vmem:[#allocation5 + $0x30] sm:$0xff]  ;;  %v470_v51 = vmov 32   ;;  %vm241_vm3 = vcmask 261120   ;;  %vm276_vm4 = vcmask 130048  }
   0xe   :  { %364 = vmatpush.msk.msra.mxu3 %vm116_vm0, %v58_v1  ;;  %86 = vperm.xlu1 %376, %v47_v2   ;;  %v45_v5 = vld [vmem:[#allocation5 + $0x18] sm:$0xff]  ;;  %v44_v9 = vld [vmem:[#allocation5 + $0x10] sm:$0xff]  ;;  %v51_v28 = vld [vmem:[#allocation5 + $0x48] sm:$0xff]  ;;  %vm305_vm5 = vcmask 64512   ;;  %s473_s0 = smov [#allocation7]   ;;  %s336_s23 = sshll.u32 %s508_s2, 4  ;;  %s337_s23 = int_to_ptr.hbm [resolvable:$true] %s336_s23 }
   0xf   :  { %348 = vmatmul.msk.f32.vlgmr.msra.gmra.mxu0 %vm99_vm1, %v42_v3  ;;  %353 = vmatmul.msk.f32.vlgmr.msra.gmra.mxu3 %vm99_vm1, %v47_v2  ;;  %v53_v32 = vld [vmem:[#allocation5 + $0x58] sm:$0xff]  ;;  %v52_v35 = vld [vmem:[#allocation5 + $0x50] sm:$0xff]  ;;  %v50_v44 = vld [vmem:[#allocation5 + $0x40] sm:$0xff]  ;;  %s334_s1 = sshll.u32 %s473_s0, 4  ;;  %s335_s1 = int_to_ptr.vmem [resolvable:$true] %s334_s1 }
  0x10   :  { %96 = vperm.xlu0 %375, %v49_v4   ;;  %76 = vperm.xlu2 %377, %v45_v5   ;;  %v54_v49 = vld [vmem:[#allocation5 + $0x60] sm:$0xff]  ;;  %v55_v50 = vld [vmem:[#allocation5 + $0x68] sm:$0xff]  ;;  %v56_v2 = vld [vmem:[#allocation5 + $0x70] sm:$0xff] }
  0x16   :  { %81 = vperm.xlu1 %376, %v46_v6  }
  0x17   :  { %349 = vmatmul.msk.f32.gmra.mxu0 %vm99_vm1, %v43_v7  ;;  %354 = vmatmul.msk.f32.gmra.mxu3 %vm99_vm1, %v48_v8 }
  0x18   :  { %91 = vperm.xlu0 %375, %v48_v8   ;;  %71 = vperm.xlu2 %377, %v44_v9  }
  0x1e   :  { %61 = vperm.xlu1 %376, %v42_v3   ;;  %v471_v3 = vmov 16  }
  0x1f   :  { %350 = vmatmul.msk.f32.gmra.mxu0 %vm99_vm1, %v44_v9  ;;  %355 = vmatmul.msk.f32.gmra.mxu3 %vm99_vm1, %v49_v4 }
  0x20   :  { %66 = vperm.xlu0 %375, %v43_v7   ;;  %378 = vset.pattern.permute.xlu2 %v469_v29 }
  0x21   :  { %186 = vperm.xlu2 %378, %v53_v32  }
  0x26   :  { %380 = vset.pattern.permute.xlu1 %v469_v29 }
  0x27   :  { %351 = vmatmul.msk.f32.gmra.mxu0 %vm99_vm1, %v45_v5  ;;  %176 = vperm.xlu1 %380, %v51_v28  }
  0x28   :  { %379 = vset.pattern.permute.xlu0 %v469_v29 }
  0x29   :  { %181 = vperm.xlu0 %379, %v52_v35   ;;  %171 = vperm.xlu2 %378, %v50_v44  }
  0x2f   :  { %352 = vmatmul.msk.f32.gmra.mxu0 %vm99_vm1, %v46_v6  ;;  %381 = vset.pattern.permute.xlu1 %v470_v51 }
  0x30   :  { %238 = vperm.xlu1 %381, %v55_v50  }
  0x31   :  { %382 = vset.pattern.permute.xlu2 %v470_v51  ;;  %383 = vset.pattern.permute.xlu0 %v471_v3 }
  0x32   :  { %233 = vperm.xlu2 %382, %v54_v49   ;;  %273 = vperm.xlu0 %383, %v56_v2  }
  0x6a   :  { %v77_v17 = vpop.permute.xlu2 %76 }
  0x72   :  { %v72_v30 = vpop.permute.xlu2 %71 }
  0x7b   :  { %v187_v52 = vpop.permute.xlu2 %186 }
  0x80   :  { %v87_v15 = vpop.permute.xlu1 %86 }
  0x82   :  { %v97_v13 = vpop.permute.xlu0 %96 }
  0x83   :  { %v172_v59 = vpop.permute.xlu2 %171 }
  0x88   :  { %v82_v23 = vpop.permute.xlu1 %81 }
  0x8a   :  { %v92_v18 = vpop.permute.xlu0 %91 }
  0x8c   :  { %v137_v10 = vpop.f32.mrf.mxu0  ;;  %v234_v5 = vpop.permute.xlu2 %233 }
  0x90   :  { %v62_v39 = vpop.permute.xlu1 %61 }
  0x91   :  { %v138_v42 = vadd.f32 %v137_v10, %v62_v39 }
  0x92   :  { %v152_v11 = vpop.f32.mrf.mxu3  ;;  %v67_v36 = vpop.permute.xlu0 %66 }
  0x93   :  { %v153_v24 = vadd.f32 %v152_v11, %v87_v15  ;;  %v161_v46 = vmax.f32 %v138_v42, 0.0 }
  0x94   :  { %v140_v12 = vpop.f32.mrf.mxu0 }
  0x95   :  { %v166_v27 = vmax.f32 %v153_v24, 0.0  ;;  %v141_v40 = vadd.f32 %v140_v12, %v67_v36  ;;  %v57_v12 = vld [vmem:[#allocation5 + $0x78] sm:$0x1] }
  0x97   :  { %v162_v45 = vmax.f32 %v141_v40, 0.0 }
  0x99   :  { %v177_v55 = vpop.permute.xlu1 %176 }
  0x9a   :  { %v155_v14 = vpop.f32.mrf.mxu3 }
  0x9b   :  { %v156_v20 = vadd.f32 %v155_v14, %v92_v18  ;;  %v182_v54 = vpop.permute.xlu0 %181 }
  0x9c   :  { %v143_v16 = vpop.f32.mrf.mxu0 }
  0x9d   :  { %v167_v26 = vmax.f32 %v156_v20, 0.0  ;;  %v144_v37 = vadd.f32 %v143_v16, %v72_v30 }
  0x9f   :  { %v163_v43 = vmax.f32 %v144_v37, 0.0 }
  0xa2   :  { %v158_v19 = vpop.f32.mrf.mxu3  ;;  %v239_v6 = vpop.permute.xlu1 %238 }
  0xa3   :  { %v159_v22 = vadd.f32 %v158_v19, %v97_v13  ;;  %v472_v13 = vmov 8  }
  0xa4   :  { %v146_v21 = vpop.f32.mrf.mxu0  ;;  %384 = vset.pattern.permute.xlu1 %v472_v13  ;;  %385 = vset.pattern.permute.xlu0 %v472_v13  ;;  %v274_v14 = vpop.permute.xlu0 %273 }
  0xa5   :  { %v168_v25 = vmax.f32 %v159_v22, 0.0  ;;  %v147_v33 = vadd.f32 %v146_v21, %v77_v17  ;;  %302 = vperm.xlu1 %384, %v57_v12  }
  0xa7   :  { %206 = vmatpush.msra.mxu1 %v168_v25  ;;  %v164_v41 = vmax.f32 %v147_v33, 0.0 }
  0xa9   :  { %207 = vmatpush.msra.mxu1 %v167_v26 }
  0xab   :  { %208 = vmatpush.msra.mxu1 %v166_v27 }
  0xac   :  { %v149_v31 = vpop.f32.mrf.mxu0 }
  0xad   :  { %v150_v34 = vadd.f32 %v149_v31, %v82_v23 }
  0xaf   :  { %v165_v38 = vmax.f32 %v150_v34, 0.0 }
  0xb1   :  { %209 = vmatpush.msra.mxu1 %v165_v38 }
  0xb3   :  { %210 = vmatpush.msra.mxu1 %v164_v41 }
  0xb5   :  { %211 = vmatpush.msra.mxu1 %v163_v43 }
  0xb7   :  { %212 = vmatpush.msra.mxu1 %v162_v45 }
  0xb9   :  { %213 = vmatpush.msra.mxu1 %v161_v46 }
  0xba   :  { %356 = vmatmul.msk.f32.vlgmr.msra.gmra.mxu1 %vm189_vm2, %v50_v44 }
  0xc2   :  { %357 = vmatmul.msk.f32.gmra.mxu1 %vm189_vm2, %v51_v28 }
  0xca   :  { %358 = vmatmul.msk.f32.gmra.mxu1 %vm189_vm2, %v52_v35 }
  0xd2   :  { %359 = vmatmul.msk.f32.gmra.mxu1 %vm189_vm2, %v53_v32 }
 0x117   :  { %v303_v18 = vpop.permute.xlu1 %302 }
 0x137   :  { %v215_v47 = vpop.f32.mrf.mxu1 }
 0x138   :  { %v216_v62 = vadd.f32 %v215_v47, %v172_v59 }
 0x13a   :  { %v227_v1 = vmax.f32 %v216_v62, 0.0 }
 0x13f   :  { %v218_v48 = vpop.f32.mrf.mxu1 }
 0x140   :  { %v219_v60 = vadd.f32 %v218_v48, %v177_v55 }
 0x142   :  { %v228_v0 = vmax.f32 %v219_v60, 0.0 }
 0x147   :  { %v221_v53 = vpop.f32.mrf.mxu1 }
 0x148   :  { %v222_v57 = vadd.f32 %v221_v53, %v182_v54 }
 0x14a   :  { %v229_v63 = vmax.f32 %v222_v57, 0.0 }
 0x14f   :  { %v224_v56 = vpop.f32.mrf.mxu1 }
 0x150   :  { %v225_v58 = vadd.f32 %v224_v56, %v187_v52 }
 0x152   :  { %v230_v61 = vmax.f32 %v225_v58, 0.0 }
 0x154   :  { %258 = vmatpush.msra.mxu2 %v230_v61 }
 0x156   :  { %259 = vmatpush.msra.mxu2 %v229_v63 }
 0x158   :  { %260 = vmatpush.msra.mxu2 %v228_v0 }
 0x15a   :  { %261 = vmatpush.msra.mxu2 %v227_v1 }
 0x15b   :  { %360 = vmatmul.msk.f32.vlgmr.msra.gmra.mxu2 %vm241_vm3, %v54_v49 }
 0x163   :  { %361 = vmatmul.msk.f32.gmra.mxu2 %vm241_vm3, %v55_v50 }
 0x1de   :  { %v263_v4 = vpop.f32.mrf.mxu2 }
 0x1df   :  { %v264_v8 = vadd.f32 %v263_v4, %v234_v5 }
 0x1e1   :  { %v269_v11 = vmax.f32 %v264_v8, 0.0 }
 0x1e6   :  { %v266_v7 = vpop.f32.mrf.mxu2 }
 0x1e7   :  { %v267_v9 = vadd.f32 %v266_v7, %v239_v6 }
 0x1e9   :  { %v270_v10 = vmax.f32 %v267_v9, 0.0 }
 0x1eb   :  { %293 = vmatpush.msrb.mxu3 %v270_v10 }
 0x1ed   :  { %294 = vmatpush.msrb.mxu3 %v269_v11 }
 0x1ee   :  { %362 = vmatmul.msk.f32.vlgmr.msrb.gmra.mxu3 %vm276_vm4, %v56_v2 }
 0x271   :  { %v296_v15 = vpop.f32.mrf.mxu3 }
 0x272   :  { %v297_v16 = vadd.f32 %v296_v15, %v274_v14 }
 0x274   :  { %v299_v17 = vmax.f32 %v297_v16, 0.0 }
 0x276   :  { %323 = vmatpush.msra.mxu3 %v299_v17 }
 0x277   :  { %363 = vmatmul.msk.f32.vlgmr.msra.gmra.mxu3 %vm305_vm5, %v57_v12 }
 0x2fa   :  { %v325_v19 = vpop.f32.mrf.mxu3 }
 0x2fb   :  { %v326_v20 = vadd.f32 %v325_v19, %v303_v18 }
 0x2fd   :  { %328 = vst [vmem:[#allocation7] sm:$0x1] %v326_v20 }
 0x2fe   :  { %339 = dma.vmem_to_hbm [thread:$0]  %s335_s1, 16, %s337_s23, [#allocation4]  }
 0x2ff   :  { %462 = dma.done.wait [#allocation4], 16  }
 0x300   :  { %463 = vsyncadd [#allocation4], 4294967280 }
 0x301   :  { %344 = vsyncpa [#allocation3], 1 }
 0x302   :  { %345 = vsyncpa [#allocation6], 1 }
 0x303   :  { %346 = vsyncpa [#allocation4], 1 }

</bundles_post_ra>
